<compile_context>
chip_gen: v7x
topology: tpu7x:2x2x1
jax: 0.10.0
libtpu: 0.0.40
codegen_flags: <defaults>
</compile_context>

<pallas_src>
import math
from functools import partial

import jax
import jax.numpy as jnp
from jax.experimental import pallas as pl
from jax.experimental.pallas import tpu as pltpu


# ----------------------------- Pallas kernels --------------------------------

def _block_kernel_proj_shortcut(x_ref, w1s_ref, adds_ref, w2_ref, o_ref, *, cout):
    """Fused block, projection shortcut (in_channels != out_channels).

    x_ref   : (Cin, B*N)     bf16, channel-first, batch merged into lanes
    w1s_ref : (2*Cout, Cin)  bf16, [conv1+bn1 ; shortcut-conv+bn] folded weights
    adds_ref: (2*Cout, B*N)  f32,  rows [:Cout]  = bn1 bias + time_mlp(temb) (per batch col)
                                   rows [Cout:] = bn2 bias + shortcut-bn bias
    w2_ref  : (Cout, Cout)   bf16, conv2+bn2 folded weights
    o_ref   : (Cout, B*N)    f32
    """
    x = x_ref[...]
    adds = adds_ref[...]
    # conv1+bn1 and shortcut share the LHS x -> one merged MXU matmul.
    hs = jnp.dot(w1s_ref[...], x, preferred_element_type=jnp.float32)   # (2Cout, BN)
    h = jnp.maximum(hs[:cout] + adds[:cout], 0.0)                       # +bias+time, ReLU
    h2 = jnp.dot(w2_ref[...], h.astype(jnp.bfloat16),
                 preferred_element_type=jnp.float32)                    # conv2+bn2
    o_ref[...] = jnp.maximum(h2 + hs[cout:] + adds[cout:], 0.0)         # residual ReLU


def _block_kernel_identity_shortcut(x_ref, w1_ref, adds_ref, w2_ref, o_ref, *, cout):
    """Fused block, identity shortcut (in_channels == out_channels).

    x stays f32 so the residual add is exact; it is cast to bf16 only for MXU.
    """
    x = x_ref[...]                                                      # (Cout, B*N) f32
    adds = adds_ref[...]
    h1 = jnp.dot(w1_ref[...], x.astype(jnp.bfloat16),
                 preferred_element_type=jnp.float32)
    h = jnp.maximum(h1 + adds[:cout], 0.0)
    h2 = jnp.dot(w2_ref[...], h.astype(jnp.bfloat16),
                 preferred_element_type=jnp.float32)
    o_ref[...] = jnp.maximum(h2 + x + adds[cout:], 0.0)


# ------------------------------- wrapper -------------------------------------

def pointnet_block(x, time_emb, params):
    """x: (B, Cin, N) f32 (PyTorch NCW); time_emb: (B, T) f32 or None.

    Returns (B, Cout, N) f32 — same axis convention as the PyTorch module.
    """
    B, Cin, N = x.shape
    Cout = params["w2"].shape[0]
    BN = B * N

    # ---- tiny wrapper-side prep: layout plumbing + per-batch bias/time -------
    # channel-first with batch merged into the lane axis: (B,Cin,N) -> (Cin,B*N)
    x_cf = jnp.transpose(x, (1, 0, 2)).reshape(Cin, BN)

    # time_mlp(temb): (B,T)@(T,Cout) is tiny; computed here so the kernel never
    # runs an N=1 f32 MXU matmul. PyTorch skips the add entirely if time_emb is
    # None, so we add exactly zero in that case.
    if time_emb is not None and params["wt"] is not None:
        t = time_emb.astype(jnp.float32) @ params["wt"].T + params["bt"][None, :]
    else:
        t = jnp.zeros((B, Cout), jnp.float32)

    add1 = t + params["b1"][None, :]                                    # (B, Cout)
    add1_cf = jnp.broadcast_to(add1.T[:, :, None], (Cout, B, N)).reshape(Cout, BN)
    add2_cf = jnp.broadcast_to(params["b2s"][:, None], (Cout, BN))
    adds = jnp.concatenate([add1_cf, add2_cf], axis=0).astype(jnp.float32)

    if params["has_shortcut"]:
        kernel = partial(_block_kernel_proj_shortcut, cout=Cout)
        x_in = x_cf.astype(jnp.bfloat16)
        w_first = params["w1s"]
    else:
        kernel = partial(_block_kernel_identity_shortcut, cout=Cout)
        x_in = x_cf.astype(jnp.float32)
        w_first = params["w1"]

    out_cf = pl.pallas_call(
        kernel,
        out_shape=jax.ShapeDtypeStruct((Cout, BN), jnp.float32),
        in_specs=[pl.BlockSpec(memory_space=pltpu.MemorySpace.VMEM)] * 4,
        out_specs=pl.BlockSpec(memory_space=pltpu.MemorySpace.VMEM),
    )(x_in, w_first, adds, params["w2"])

    return jnp.transpose(out_cf.reshape(Cout, B, N), (1, 0, 2))


# ------------------------- parameter construction ---------------------------

_EPS = 1e-5


def _fold_conv_bn(key, cin, cout):
    """Deterministic Conv1d(k=1) + BatchNorm1d (eval, fresh stats), folded.

    Returns w_eff (cout, cin) f32 for channel-first h = w @ x, b_eff (cout,) f32.
    """
    k1, k2, k3, k4 = jax.random.split(key, 4)
    w = jax.random.normal(k1, (cout, cin), jnp.float32) / math.sqrt(cin)
    b = 0.1 * jax.random.normal(k2, (cout,), jnp.float32)
    gamma = 1.0 + 0.1 * jax.random.normal(k3, (cout,), jnp.float32)
    beta = 0.1 * jax.random.normal(k4, (cout,), jnp.float32)
    scale = gamma / jnp.sqrt(1.0 + _EPS)          # running_mean = 0, running_var = 1
    return w * scale[:, None], b * scale + beta


def init_pointnet_block_params(key, in_channels, out_channels, time_emb_dim):
    k1, k2, k3, k4 = jax.random.split(key, 4)
    w1, b1 = _fold_conv_bn(k1, in_channels, out_channels)
    w2, b2 = _fold_conv_bn(k2, out_channels, out_channels)

    has_shortcut = in_channels != out_channels
    params = {
        "has_shortcut": has_shortcut,
        "b1": b1,                                  # bn1 bias (time term added in wrapper)
        "w2": w2.astype(jnp.bfloat16),
    }
    if has_shortcut:
        ws, bs = _fold_conv_bn(k3, in_channels, out_channels)
        # conv1 and shortcut weights merged along output channels: one MXU
        # matmul shares the x operand.
        params["w1s"] = jnp.concatenate([w1, ws], axis=0).astype(jnp.bfloat16)
        params["b2s"] = b2 + bs                    # both added just before final ReLU
    else:
        params["w1"] = w1.astype(jnp.bfloat16)
        params["b2s"] = b2

    if time_emb_dim is not None:
        kw, kb = jax.random.split(k4)
        params["wt"] = (jax.random.normal(kw, (out_channels, time_emb_dim), jnp.float32)
                        / math.sqrt(time_emb_dim))
        params["bt"] = 0.1 * jax.random.normal(kb, (out_channels,), jnp.float32)
    else:
        params["wt"] = None
        params["bt"] = None
    return params


# --------------------------- pure-JAX reference ------------------------------

def pointnet_block_ref(x, time_emb, params):
    """Reference mirroring the kernel's numerics (bf16 weights/x, f32 accumulate)."""
    Cout = params["w2"].shape[0]
    if time_emb is not None and params["wt"] is not None:
        t = time_emb.astype(jnp.float32) @ params["wt"].T + params["bt"][None, :]
    else:
        t = jnp.zeros((x.shape[0], Cout), jnp.float32)

    xk = x.astype(jnp.bfloat16).astype(jnp.float32)
    if params["has_shortcut"]:
        w1s = params["w1s"].astype(jnp.float32)
        h1 = jnp.einsum("oc,bcn->bon", w1s[:Cout], xk)
        ident = jnp.einsum("oc,bcn->bon", w1s[Cout:], xk)
    else:
        h1 = jnp.einsum("oc,bcn->bon", params["w1"].astype(jnp.float32), xk)
        ident = x
    h = jnp.maximum(h1 + (t + params["b1"][None, :])[:, :, None], 0.0)
    h2 = jnp.einsum("oc,bcn->bon", params["w2"].astype(jnp.float32),
                    h.astype(jnp.bfloat16).astype(jnp.float32))
    return jnp.maximum(h2 + ident + params["b2s"][None, :, None], 0.0)


# --------------------------------- main --------------------------------------

if __name__ == "__main__":
    B, Cin, Cout, N, T = 2, 4, 32, 128, 32

    key = jax.random.PRNGKey(0)
    k_param, k_x, k_t = jax.random.split(key, 3)

    params = init_pointnet_block_params(k_param, Cin, Cout, T)
    x = jax.random.normal(k_x, (B, Cin, N), jnp.float32)        # PyTorch NCW layout
    time_emb = jax.random.normal(k_t, (B, T), jnp.float32)

    out = jax.block_until_ready(pointnet_block(x, time_emb, params))

    assert out.shape == (B, Cout, N), out.shape
    assert bool(jnp.all(jnp.isfinite(out)))
    assert bool(jnp.all(out >= 0.0))                            # final ReLU => non-negative

    ref = pointnet_block_ref(x, time_emb, params)
    assert bool(jnp.allclose(out, ref, rtol=1e-2, atol=1e-2)), (
        "max abs diff vs reference: %f" % float(jnp.max(jnp.abs(out - ref))))

    print("KERNEL_OK")
</pallas_src>

<mosaic_0001>
module attributes {stable_mosaic.version = 11 : i64} {
  func.func @_block_kernel_proj_shortcut(%arg0: memref<4x256xbf16, #tpu.memory_space<vmem>>, %arg1: memref<64x4xbf16, #tpu.memory_space<vmem>>, %arg2: memref<64x256xf32, #tpu.memory_space<vmem>>, %arg3: memref<32x32xbf16, #tpu.memory_space<vmem>>, %arg4: memref<32x256xf32, #tpu.memory_space<vmem>>) attributes {dimension_semantics = [], scalar_prefetch = 0 : i64, scratch_operands = 0 : i64, tpu.core_type = #tpu.core_type<tc>} {
    %c0 = arith.constant 0 : index
    %c0_0 = arith.constant 0 : index
    %0 = vector.load %arg0[%c0, %c0_0] : memref<4x256xbf16, #tpu.memory_space<vmem>>, vector<4x256xbf16>
    %c0_1 = arith.constant 0 : index
    %c0_2 = arith.constant 0 : index
    %1 = vector.load %arg2[%c0_1, %c0_2] : memref<64x256xf32, #tpu.memory_space<vmem>>, vector<64x256xf32>
    %c0_3 = arith.constant 0 : index
    %c0_4 = arith.constant 0 : index
    %2 = vector.load %arg1[%c0_3, %c0_4] : memref<64x4xbf16, #tpu.memory_space<vmem>>, vector<64x4xbf16>
    %cst = arith.constant dense<0.000000e+00> : vector<64x256xf32>
    %3 = tpu.matmul %2, %0, %cst {dimension_numbers = #tpu.dot_dimension_numbers<[1], [0], [0], [1], [0, 0, 1, 1], [], []>} : vector<64x4xbf16>, vector<4x256xbf16>, vector<64x256xf32> -> vector<64x256xf32>
    %4 = vector.extract_strided_slice %3 {offsets = [0, 0], sizes = [32, 256], strides = [1, 1]} : vector<64x256xf32> to vector<32x256xf32>
    %5 = vector.extract_strided_slice %1 {offsets = [0, 0], sizes = [32, 256], strides = [1, 1]} : vector<64x256xf32> to vector<32x256xf32>
    %6 = arith.addf %4, %5 : vector<32x256xf32>
    %cst_5 = arith.constant 0.000000e+00 : f32
    %7 = vector.broadcast %cst_5 : f32 to vector<32x256xf32>
    %8 = arith.maximumf %6, %7 : vector<32x256xf32>
    %c0_6 = arith.constant 0 : index
    %c0_7 = arith.constant 0 : index
    %9 = vector.load %arg3[%c0_6, %c0_7] : memref<32x32xbf16, #tpu.memory_space<vmem>>, vector<32x32xbf16>
    %10 = arith.truncf %8 : vector<32x256xf32> to vector<32x256xbf16>
    %cst_8 = arith.constant dense<0.000000e+00> : vector<32x256xf32>
    %11 = tpu.matmul %9, %10, %cst_8 {dimension_numbers = #tpu.dot_dimension_numbers<[1], [0], [0], [1], [0, 0, 1, 1], [], []>} : vector<32x32xbf16>, vector<32x256xbf16>, vector<32x256xf32> -> vector<32x256xf32>
    %12 = vector.extract_strided_slice %3 {offsets = [32, 0], sizes = [32, 256], strides = [1, 1]} : vector<64x256xf32> to vector<32x256xf32>
    %13 = arith.addf %11, %12 : vector<32x256xf32>
    %14 = vector.extract_strided_slice %1 {offsets = [32, 0], sizes = [32, 256], strides = [1, 1]} : vector<64x256xf32> to vector<32x256xf32>
    %15 = arith.addf %13, %14 : vector<32x256xf32>
    %cst_9 = arith.constant 0.000000e+00 : f32
    %16 = vector.broadcast %cst_9 : f32 to vector<32x256xf32>
    %17 = arith.maximumf %15, %16 : vector<32x256xf32>
    %c0_10 = arith.constant 0 : index
    %c0_11 = arith.constant 0 : index
    %18 = vector.load %arg4[%c0_10, %c0_11] : memref<32x256xf32, #tpu.memory_space<vmem>>, vector<32x256xf32>
    tpu.vector_store %arg4[%c0_10, %c0_11], %17 {strides = array<i32>} : memref<32x256xf32, #tpu.memory_space<vmem>>, vector<32x256xf32>,
    return
  }
}

</mosaic_0001>

<bundles_post_ra>
// kernel: tpu_custom_call.1
= control target key start
LH: loop header
LB: loop body
LE: loop exit
PB: predicated region body
PF: predicated region fallthrough
CT: control target
= control target key end

     0   :  { %9 = vsyncpa [#allocation3], 0  ;;  %s485_s0 = inlined_call_operand.vmem [shape: bf16[4,256], index: 0, kind: input, shape index: {}]   ;;  %s486_s1 = inlined_call_operand.vmem [shape: bf16[64,4], index: 1, kind: input, shape index: {}]   ;;  %s487_s2 = inlined_call_operand.hbm [shape: f32[64,256], index: 2, kind: input, shape index: {}]   ;;  %s488_s3 = inlined_call_operand.vmem [shape: bf16[32,32], index: 3, kind: input, shape index: {}]   ;;  %s489_s4 = inlined_call_operand.hbm [shape: f32[32,256], index: 4, kind: output, shape index: {}]  }
   0x1   :  { %10 = vsyncpa [#allocation4], 0  ;;  %s398_s15 = smov [#allocation2]   ;;  %s350_s19 = scalar_lea.hbm %s487_s2, 2048 }
   0x2   :  { %s20_s16 = sshll.u32 %s398_s15, 4  ;;  %p351_p0 = scmp.ne.s32.totalorder %s487_s2, %s350_s19  ;;  %s21_s16 = int_to_ptr.vmem [resolvable:$true] %s20_s16 }
   0x3   :  { %p354_p1 = scmp.lt.u32.totalorder %s350_s19, %s487_s2 }
   0x5   :  { %p356_p2 = pnand %p354_p1, %p351_p0 }
   0x7   :  { %359 = shalt.err (!%p356_p2)
}
   0x8   :  { %s360_s24 = scalar_lea.vmem %s21_s16, 2048  ;;  %p365_p4 = scmp.lt.s32.totalorder %s21_s16, %s21_s16 }
   0x9   :  { %p361_p3 = scmp.ne.s32.totalorder %s21_s16, %s360_s24  ;;  %p366_p5 = scmp.lt.s32.totalorder %s360_s24, %s360_s24 }
   0xb   :  { %p367_p6 = por %p366_p5, %p365_p4 }
   0xd   :  { %p368_p7 = pnand %p367_p6, %p361_p3 }
   0xf   :  { %371 = shalt.err (!%p368_p7)
}
  0x10   :  { %s399_s25 = smov 256   ;;  %s400_s26 = smov 16  }
  0x11   :  { %26 = dma.hbm_to_vmem [thread:$0]  %s487_s2, 2048, %s21_s16, [#allocation3], %s399_s25, %s399_s25, %s400_s26  }
  0x12   :  { %394 = dma.done.wait [#allocation3], 2048  }
  0x13   :  { %395 = vsyncadd [#allocation3], 4294965248  ;;  %v401_v0 = vmov 0   ;;  %vm100_vm0 = vcmask 1041408   ;;  %v344_v4 = vld [vmem:[%s486_s1] sm:$0xff]   ;;  %vm87_vm1 = vcmask 31744  }
  0x14   :  { %139 = vmatprep.mubr.bf16.mxu0 %v401_v0  ;;  %149 = vmatprep.mubr.bf16.mxu1 %v401_v0  ;;  %v319_v1 = vld.sshfl [vmem:[%s485_s0] sm:$0x33 pattern:$0x76325410]  ;;  %v345_v5 = vld [vmem:[%s486_s1 + $0x8] sm:$0xff]   ;;  %v346_v6 = vld [vmem:[%s486_s1 + $0x10] sm:$0xff]  }
  0x15   :  { %v86_v2 = vcombine.high %v319_v1, %v319_v1  ;;  %v102_v3 = vsel %vm100_vm0, %v319_v1, 0  ;;  %v348_v7 = vld [vmem:[%s486_s1 + $0x18] sm:$0xff]   ;;  %v34_v8 = vld [vmem:[#allocation2] sm:$0xff]  ;;  %v35_v10 = vld [vmem:[#allocation2 + $0x8] sm:$0xff]  ;;  %vm214_vm2 = vcmask 261120  }
  0x16   :  { %v38_v9 = vld [vmem:[#allocation2 + $0x20] sm:$0xff]  ;;  %v39_v11 = vld [vmem:[#allocation2 + $0x28] sm:$0xff]  ;;  %v36_v14 = vld [vmem:[#allocation2 + $0x10] sm:$0xff] }
  0x17   :  { %320 = vmatprep.subr.msk.bf16.mxu0 %vm100_vm0, %v86_v2  ;;  %329 = vmatprep.subr.msk.bf16.mxu1 %vm100_vm0, %v86_v2  ;;  %v40_v15 = vld [vmem:[#allocation2 + $0x30] sm:$0xff]  ;;  %v37_v20 = vld [vmem:[#allocation2 + $0x18] sm:$0xff]  ;;  %v347_v44 = vld [vmem:[%s488_s3] sm:$0xff]  }
  0x18   :  { %108 = vmatpush1.bf16.msra.mxu0 %v102_v3  ;;  %330 = vmatpush1.bf16.msra.mxu1 %v102_v3  ;;  %v41_v21 = vld [vmem:[#allocation2 + $0x38] sm:$0xff]  ;;  %v349_v45 = vld [vmem:[%s488_s3 + $0x8] sm:$0xff]   ;;  %v42_v54 = vld [vmem:[#allocation2 + $0x40] sm:$0xff]  ;;  %s402_s3 = smov [#allocation5]  }
  0x19   :  { %v43_v57 = vld [vmem:[#allocation2 + $0x48] sm:$0xff]  ;;  %v44_v60 = vld [vmem:[#allocation2 + $0x50] sm:$0xff]  ;;  %s303_s14 = sshll.u32 %s402_s3, 4  ;;  %s304_s14 = int_to_ptr.vmem [resolvable:$true] %s303_s14 }
  0x1a   :  { %s372_s15 = scalar_lea.vmem %s304_s14, 1024  ;;  %p377_p9 = scmp.lt.s32.totalorder %s304_s14, %s304_s14 }
  0x1b   :  { %321 = vmatmul.mubr.msk.bf16.vlgmr.msra.gmra.mrb[0].mxu0 %vm87_vm1, %v344_v4  ;;  %322 = vmatmul.mubr.msk.bf16.vlgmr.msra.gmra.mrb[0].mxu1 %vm87_vm1, %v345_v5  ;;  %p373_p8 = scmp.ne.s32.totalorder %s304_s14, %s372_s15  ;;  %p378_p10 = scmp.lt.s32.totalorder %s372_s15, %s372_s15 }
  0x1c   :  { %159 = vmatprep.mubr.bf16.mxu1 %v401_v0  ;;  %253 = vmatprep.mubr.bf16.mxu0 %v401_v0 }
  0x1d   :  { %p379_p11 = por %p378_p10, %p377_p9 }
  0x1f   :  { %p380_p12 = pnand %p379_p11, %p373_p8 }
  0x23   :  { %323 = vmatmul.mubr.msk.bf16.gmra.mrb[4].mxu1 %vm87_vm1, %v346_v6 }
  0x24   :  { %169 = vmatprep.mubr.bf16.mxu1 %v401_v0 }
  0x2b   :  { %324 = vmatmul.mubr.msk.bf16.gmra.mrb[8].mxu1 %vm87_vm1, %v348_v7 }
  0xee   :  { %v141_v12 = vpop.f32.mrb[0].mxu0  ;;  %v151_v13 = vpop.f32.mrb[0].mxu1 }
  0xef   :  { %v180_v16 = vadd.f32 %v141_v12, %v34_v8  ;;  %v143_v17 = vpop.f32.mrb[1].mxu0  ;;  %v184_v18 = vadd.f32 %v151_v13, %v38_v9  ;;  %v153_v19 = vpop.f32.mrb[1].mxu1  ;;  %v47_v13 = vld [vmem:[#allocation2 + $0x68] sm:$0xff] }
  0xf0   :  { %v181_v22 = vadd.f32 %v143_v17, %v35_v10  ;;  %v145_v23 = vpop.f32.mrb[2].mxu0  ;;  %v185_v24 = vadd.f32 %v153_v19, %v39_v11  ;;  %v155_v25 = vpop.f32.mrb[2].mxu1  ;;  %v46_v10 = vld [vmem:[#allocation2 + $0x60] sm:$0xff] }
  0xf1   :  { %v192_v26 = vmax.f32 %v184_v18, 0.0  ;;  %v182_v27 = vadd.f32 %v145_v23, %v36_v14  ;;  %v147_v28 = vpop.f32.mrb[3].mxu0  ;;  %v186_v29 = vadd.f32 %v155_v25, %v40_v15  ;;  %v157_v30 = vpop.f32.mrb[3].mxu1  ;;  %v188_v34 = vmax.f32 %v180_v16, 0.0  ;;  %v48_v16 = vld [vmem:[#allocation2 + $0x70] sm:$0xff] }
  0xf2   :  { %v193_v31 = vmax.f32 %v185_v24, 0.0  ;;  %v183_v32 = vadd.f32 %v147_v28, %v37_v20  ;;  %v187_v33 = vadd.f32 %v157_v30, %v41_v21  ;;  %v189_v37 = vmax.f32 %v181_v22, 0.0  ;;  %v49_v20 = vld [vmem:[#allocation2 + $0x78] sm:$0xff] }
  0xf3   :  { %v190_v35 = vmax.f32 %v182_v27, 0.0  ;;  %v194_v36 = vmax.f32 %v186_v29, 0.0 }
  0xf4   :  { %v191_v38 = vmax.f32 %v183_v32, 0.0  ;;  %v195_v39 = vmax.f32 %v187_v33, 0.0 }
  0xf5   :  { %v200_v40 = vpack.c.bf16 %v190_v35, %v188_v34  ;;  %v202_v41 = vpack.c.bf16 %v194_v36, %v192_v26 }
  0xf6   :  { %v201_v42 = vpack.c.bf16 %v191_v38, %v189_v37  ;;  %v203_v43 = vpack.c.bf16 %v195_v39, %v193_v31  ;;  %v161_v46 = vpop.f32.mrb[4].mxu1 }
  0xf7   :  { %v163_v47 = vpop.f32.mrb[5].mxu1 }
  0xf8   :  { %221 = vmatprep.subr.bf16.mxu0 %v201_v42  ;;  %v165_v48 = vpop.f32.mrb[6].mxu1 }
  0xf9   :  { %222 = vmatpush1.bf16.msra.mxu0 %v200_v40  ;;  %v167_v49 = vpop.f32.mrb[7].mxu1 }
  0xfa   :  { %223 = vmatprep.subr.bf16.mxu0 %v203_v43 }
  0xfd   :  { %224 = vmatpush1.bf16.msra.mxu0 %v202_v41 }
  0xfe   :  { %v171_v50 = vpop.f32.mrb[8].mxu1 }
  0xff   :  { %v173_v51 = vpop.f32.mrb[9].mxu1 }
 0x100   :  { %327 = vmatmul.mubr.msk.bf16.vlgmr.msra.gmra.mrb[4].mxu0 %vm214_vm2, %v347_v44  ;;  %v175_v52 = vpop.f32.mrb[10].mxu1 }
 0x101   :  { %263 = vmatprep.mubr.bf16.mxu0 %v401_v0  ;;  %v177_v53 = vpop.f32.mrb[11].mxu1  ;;  %v45_v0 = vld [vmem:[#allocation2 + $0x58] sm:$0xff] }
 0x108   :  { %328 = vmatmul.mubr.msk.bf16.gmra.mrb[8].mxu0 %vm214_vm2, %v349_v45 }
 0x1d3   :  { %v255_v55 = vpop.f32.mrb[4].mxu0 }
 0x1d4   :  { %v256_v56 = vadd.f32 %v255_v55, %v161_v46  ;;  %v257_v58 = vpop.f32.mrb[5].mxu0 }
 0x1d5   :  { %v258_v59 = vadd.f32 %v257_v58, %v163_v47  ;;  %v259_v61 = vpop.f32.mrb[6].mxu0 }
 0x1d6   :  { %v274_v62 = vadd.f32 %v256_v56, %v42_v54  ;;  %v260_v63 = vadd.f32 %v259_v61, %v165_v48  ;;  %v261_v1 = vpop.f32.mrb[7].mxu0 }
 0x1d7   :  { %v275_v2 = vadd.f32 %v258_v59, %v43_v57  ;;  %v262_v3 = vadd.f32 %v261_v1, %v167_v49 }
 0x1d8   :  { %v282_v4 = vmax.f32 %v274_v62, 0.0  ;;  %v276_v5 = vadd.f32 %v260_v63, %v44_v60 }
 0x1d9   :  { %v283_v6 = vmax.f32 %v275_v2, 0.0  ;;  %v277_v7 = vadd.f32 %v262_v3, %v45_v0 }
 0x1da   :  { %290 = vst [vmem:[#allocation5] sm:$0xff] %v282_v4  ;;  %v284_v8 = vmax.f32 %v276_v5, 0.0 }
 0x1db   :  { %291 = vst [vmem:[#allocation5 + $0x8] sm:$0xff] %v283_v6  ;;  %v285_v9 = vmax.f32 %v277_v7, 0.0  ;;  %v265_v11 = vpop.f32.mrb[8].mxu0 }
 0x1dc   :  { %292 = vst [vmem:[#allocation5 + $0x10] sm:$0xff] %v284_v8  ;;  %v266_v12 = vadd.f32 %v265_v11, %v171_v50  ;;  %v267_v14 = vpop.f32.mrb[9].mxu0 }
 0x1dd   :  { %293 = vst [vmem:[#allocation5 + $0x18] sm:$0xff] %v285_v9  ;;  %v268_v15 = vadd.f32 %v267_v14, %v173_v51  ;;  %v269_v17 = vpop.f32.mrb[10].mxu0 }
 0x1de   :  { %v278_v18 = vadd.f32 %v266_v12, %v46_v10  ;;  %v270_v19 = vadd.f32 %v269_v17, %v175_v52  ;;  %v271_v21 = vpop.f32.mrb[11].mxu0 }
 0x1df   :  { %v279_v22 = vadd.f32 %v268_v15, %v47_v13  ;;  %v272_v23 = vadd.f32 %v271_v21, %v177_v53 }
 0x1e0   :  { %v286_v24 = vmax.f32 %v278_v18, 0.0  ;;  %v280_v25 = vadd.f32 %v270_v19, %v48_v16 }
 0x1e1   :  { %v287_v26 = vmax.f32 %v279_v22, 0.0  ;;  %v281_v27 = vadd.f32 %v272_v23, %v49_v20 }
 0x1e2   :  { %294 = vst [vmem:[#allocation5 + $0x20] sm:$0xff] %v286_v24  ;;  %v288_v28 = vmax.f32 %v280_v25, 0.0 }
 0x1e3   :  { %295 = vst [vmem:[#allocation5 + $0x28] sm:$0xff] %v287_v26  ;;  %v289_v29 = vmax.f32 %v281_v27, 0.0 }
 0x1e4   :  { %296 = vst [vmem:[#allocation5 + $0x30] sm:$0xff] %v288_v28 }
 0x1e5   :  { %297 = vst [vmem:[#allocation5 + $0x38] sm:$0xff] %v289_v29 }
 0x1e6   :  { %383 = shalt.err (!%p380_p12)
}
 0x1e7   :  { %s384_s18 = scalar_lea.hbm %s489_s4, 1024 }
 0x1e8   :  { %p385_p13 = scmp.ne.s32.totalorder %s489_s4, %s384_s18  ;;  %p388_p0 = scmp.lt.u32.totalorder %s384_s18, %s489_s4 }
 0x1ea   :  { %p390_p1 = pnand %p388_p0, %p385_p13 }
 0x1ec   :  { %393 = shalt.err (!%p390_p1)
}
 0x1ed   :  { %309 = dma.vmem_to_hbm [thread:$0]  %s304_s14, 1024, %s489_s4, [#allocation4], %s399_s25, %s399_s25, %s400_s26  }
 0x1ee   :  { %396 = dma.done.wait [#allocation4], 1024  }
 0x1ef   :  { %397 = vsyncadd [#allocation4], 4294966272 }
 0x1f0   :  { %313 = vsyncpa [#allocation3], 1 }
 0x1f1   :  { %314 = vsyncpa [#allocation4], 1 }

</bundles_post_ra>
